<compile_context>
chip_gen: v5e
topology: v5e:2x2
jax: 0.10.0
libtpu: 0.0.40
codegen_flags: <defaults>
</compile_context>

<pallas_src>
import functools

import jax
import jax.numpy as jnp
from jax.experimental import pallas as pl
from jax.experimental.pallas import tpu as pltpu

LN_EPS = 1e-5   # nn.LayerNorm default
LANE = 128
SUBLANE = 8


def _round_up(n, m):
    return (n + m - 1) // m * m


def _silu(x):
    return x * jax.nn.sigmoid(x)


def _layernorm_padcols(x, gamma, beta, inv_n):
    """LayerNorm over the last axis when padded columns of `x` are zero.

    Uses var = E[x^2] - mu^2 so no column mask is needed (sums over zero-padded columns are
    exact).  gamma/beta are zero in the padded region, so the output stays zero there.
    """
    mu = jnp.sum(x, axis=-1, keepdims=True) * inv_n
    ex2 = jnp.sum(x * x, axis=-1, keepdims=True) * inv_n
    var = jnp.maximum(ex2 - mu * mu, 0.0)
    return (x - mu) * jax.lax.rsqrt(var + LN_EPS) * gamma + beta


def resblock_kernel(
    x_ref, emb_ref, ctx_ref,
    ln1_g_ref, ln1_b_ref,          # LayerNorm(channels)   (padded to Cp)
    w_in_ref, w_emb_ref, w_ctx_ref, b_mid_ref,   # bf16 weights, f32 folded bias (to mid)
    ln2_g_ref, ln2_b_ref,          # LayerNorm(mid)        (padded to Mp)
    w_out_ref, b_out_ref,          # Linear(mid -> channels), zero-initialized in the module
    o_ref,
    *, inv_c, inv_m,
):
    x = x_ref[...].astype(jnp.float32)

    # --- in_layers: LayerNorm -> SiLU (f32 elementwise) ---
    h = _silu(_layernorm_padcols(x, ln1_g_ref[...], ln1_b_ref[...], inv_c))

    # --- emb_layers / context_layers: SiLU (padded cols are zero -> silu(0) = 0) ---
    e = _silu(emb_ref[...].astype(jnp.float32))
    c = _silu(ctx_ref[...].astype(jnp.float32))

    # --- three projections to mid, accumulated in f32 (no concat/copy buffer) ---
    hm = jnp.dot(h.astype(jnp.bfloat16), w_in_ref[...], preferred_element_type=jnp.float32)
    hm = hm + jnp.dot(e.astype(jnp.bfloat16), w_emb_ref[...], preferred_element_type=jnp.float32)
    hm = hm + jnp.dot(c.astype(jnp.bfloat16), w_ctx_ref[...], preferred_element_type=jnp.float32)
    hm = hm + b_mid_ref[...]

    # --- out_layers: LayerNorm -> SiLU -> Dropout -> Linear ---
    h2 = _silu(_layernorm_padcols(hm, ln2_g_ref[...], ln2_b_ref[...], inv_m))
    # TODO(synk): Dropout implemented as identity (eval mode); training-mode dropout not implemented.
    out = jnp.dot(h2.astype(jnp.bfloat16), w_out_ref[...],
                  preferred_element_type=jnp.float32) + b_out_ref[...]

    # residual (padded rows/cols are sliced off by the wrapper)
    o_ref[...] = (x + out).astype(o_ref.dtype)


# ---------------- one-time parameter preparation (padding, bf16 casts, bias folding) ----------------
def prepare_resblock_params(p):
    C, M = p["w_in"].shape
    E = p["w_emb"].shape[0]
    CC = p["w_ctx"].shape[0]
    Cp, Ep, CCp, Mp = (_round_up(d, LANE) for d in (C, E, CC, M))

    def pad2(a, rows, cols):
        if a.shape == (rows, cols):
            return a
        return jnp.pad(a, ((0, rows - a.shape[0]), (0, cols - a.shape[1])))

    return {
        "ln1_g": pad2(p["ln1_g"], 1, Cp),
        "ln1_b": pad2(p["ln1_b"], 1, Cp),
        "w_in": pad2(p["w_in"], Cp, Mp).astype(jnp.bfloat16),
        "w_emb": pad2(p["w_emb"], Ep, Mp).astype(jnp.bfloat16),
        "w_ctx": pad2(p["w_ctx"], CCp, Mp).astype(jnp.bfloat16),
        "b_mid": pad2(p["b_in"] + p["b_emb"] + p["b_ctx"], 1, Mp),
        "ln2_g": pad2(p["ln2_g"], 1, Mp),
        "ln2_b": pad2(p["ln2_b"], 1, Mp),
        "w_out": pad2(p["w_out"], Mp, Cp).astype(jnp.bfloat16),
        "b_out": pad2(p["b_out"], 1, Cp),
        "dims": (C, E, CC, M),
        "padded_dims": (Cp, Ep, CCp, Mp),
    }


def _pick_tb(Bp, tb_max=512, min_steps=2):
    """Largest multiple-of-8 divisor of Bp <= tb_max, preferring >= min_steps grid steps."""
    cands = [d for d in range(SUBLANE, min(tb_max, Bp) + 1, SUBLANE) if Bp % d == 0]
    if not cands:
        return min(Bp, SUBLANE)
    multi = [d for d in cands if Bp // d >= min_steps]
    pool = multi if multi else cands
    return max(pool)


def _vmem_limit_bytes():
    try:
        cap = int(pltpu.get_tpu_info().vmem_capacity_bytes)
    except Exception:
        cap = 128 * 1024 * 1024
    # ~48 MiB on 64 MiB parts (v7x), ~96 MiB on 128 MiB parts (v5e/v6e).
    return min((cap * 3) // 4, 100 * 1024 * 1024)


def resblock_forward(x, emb, ctx, prepped, *, tb_max=512):
    """ResBlock forward. `prepped` comes from prepare_resblock_params (done once at init)."""
    C, E, CC, M = prepped["dims"]
    Cp, Ep, CCp, Mp = prepped["padded_dims"]
    B = x.shape[0]

    Bp = _round_up(B, SUBLANE)
    tb = _pick_tb(Bp, tb_max=tb_max)
    grid = (Bp // tb,)

    def maybe_pad(a, rows, cols, dtype=None):
        if dtype is not None and a.dtype != dtype:
            a = a.astype(dtype)
        if a.shape != (rows, cols):
            a = jnp.pad(a, ((0, rows - a.shape[0]), (0, cols - a.shape[1])))
        return a

    xp = maybe_pad(x, Bp, Cp)                           # f32: residual add stays exact
    ep = maybe_pad(emb, Bp, Ep, dtype=jnp.bfloat16)     # streamed as bf16 (SiLU + bf16 matmul only)
    ctxp = maybe_pad(ctx, Bp, CCp, dtype=jnp.bfloat16)

    def row(ncols):
        return pl.BlockSpec((tb, ncols), lambda i: (i, 0))

    def resident(nrows, ncols):
        # Constant index_map: weights stay resident; single buffer (no double-buffering needed).
        return pl.BlockSpec((nrows, ncols), lambda i: (0, 0), pipeline_mode=pl.Buffered(1))

    kernel = functools.partial(resblock_kernel, inv_c=1.0 / C, inv_m=1.0 / M)

    # TODO(synk): for very large mid/channel configs on 64 MiB-VMEM parts, add a second
    # ("arbitrary") grid axis tiling Mp and accumulate the out-projection across it.
    out = pl.pallas_call(
        kernel,
        out_shape=jax.ShapeDtypeStruct((Bp, Cp), x.dtype),
        grid_spec=pltpu.PrefetchScalarGridSpec(
            num_scalar_prefetch=0,
            grid=grid,
            in_specs=[
                row(Cp), row(Ep), row(CCp),
                resident(1, Cp), resident(1, Cp),              # ln1
                resident(Cp, Mp), resident(Ep, Mp),            # w_in, w_emb
                resident(CCp, Mp), resident(1, Mp),            # w_ctx, folded mid bias
                resident(1, Mp), resident(1, Mp),              # ln2
                resident(Mp, Cp), resident(1, Cp),             # out linear
            ],
            out_specs=row(Cp),
        ),
        compiler_params=pltpu.CompilerParams(
            dimension_semantics=("parallel",),
            vmem_limit_bytes=_vmem_limit_bytes(),
        ),
    )(xp, ep, ctxp,
      prepped["ln1_g"], prepped["ln1_b"],
      prepped["w_in"], prepped["w_emb"], prepped["w_ctx"], prepped["b_mid"],
      prepped["ln2_g"], prepped["ln2_b"],
      prepped["w_out"], prepped["b_out"])

    if (Bp, Cp) != (B, C):
        out = out[:B, :C]
    return out


# ---------------- pure-JAX reference (mirrors the PyTorch module, f32) ----------------
def _layernorm_ref(x, gamma, beta):
    mu = jnp.mean(x, axis=-1, keepdims=True)
    var = jnp.mean((x - mu) ** 2, axis=-1, keepdims=True)
    return (x - mu) * jax.lax.rsqrt(var + LN_EPS) * gamma + beta


def resblock_reference(x, emb, ctx, p):
    h = _silu(_layernorm_ref(x, p["ln1_g"], p["ln1_b"])) @ p["w_in"] + p["b_in"]
    e = _silu(emb) @ p["w_emb"] + p["b_emb"]
    c = _silu(ctx) @ p["w_ctx"] + p["b_ctx"]
    h = h + e + c
    h = _silu(_layernorm_ref(h, p["ln2_g"], p["ln2_b"])) @ p["w_out"] + p["b_out"]
    return x + h


def make_params(key, channels, mid, emb_ch, ctx_ch, zero_out=True):
    ks = jax.random.split(key, 8)

    def lin(k, fan_in, fan_out):
        bound = 1.0 / (fan_in ** 0.5)
        kw, kb = jax.random.split(k)
        w = jax.random.uniform(kw, (fan_in, fan_out), jnp.float32, -bound, bound)
        b = jax.random.uniform(kb, (1, fan_out), jnp.float32, -bound, bound)
        return w, b

    w_in, b_in = lin(ks[0], channels, mid)
    w_emb, b_emb = lin(ks[1], emb_ch, mid)
    w_ctx, b_ctx = lin(ks[2], ctx_ch, mid)
    if zero_out:
        w_out = jnp.zeros((mid, channels), jnp.float32)
        b_out = jnp.zeros((1, channels), jnp.float32)
    else:
        w_out, b_out = lin(ks[3], mid, channels)

    return {
        "ln1_g": jnp.ones((1, channels), jnp.float32),
        "ln1_b": jnp.zeros((1, channels), jnp.float32),
        "w_in": w_in, "b_in": b_in,
        "w_emb": w_emb, "b_emb": b_emb,
        "w_ctx": w_ctx, "b_ctx": b_ctx,
        "ln2_g": jnp.ones((1, mid), jnp.float32),
        "ln2_b": jnp.zeros((1, mid), jnp.float32),
        "w_out": w_out, "b_out": b_out,
    }


if __name__ == "__main__":
    B, CHANNELS, MID, EMB_CH, CTX_CH = 16, 32, 64, 16, 64

    key = jax.random.PRNGKey(0)
    kx, ke, kc, kp = jax.random.split(key, 4)
    x = jax.random.normal(kx, (B, CHANNELS), jnp.float32)
    emb = jax.random.normal(ke, (B, EMB_CH), jnp.float32)
    ctx = jax.random.normal(kc, (B, CTX_CH), jnp.float32)

    # Faithful init (zero_module on the out linear): output == x exactly.
    params = make_params(kp, CHANNELS, MID, EMB_CH, CTX_CH, zero_out=True)
    prepped = prepare_resblock_params(params)          # one-time param prep
    out = jax.block_until_ready(resblock_forward(x, emb, ctx, prepped))
    ref = resblock_reference(x, emb, ctx, params)
    assert jnp.allclose(out, ref, atol=1e-5, rtol=1e-5), "mismatch (zeroed out-layer)"

    # Non-zero out layer exercises the full compute path (bf16 matmul operands vs f32 reference).
    params_nz = make_params(kp, CHANNELS, MID, EMB_CH, CTX_CH, zero_out=False)
    prepped_nz = prepare_resblock_params(params_nz)
    out_nz = jax.block_until_ready(resblock_forward(x, emb, ctx, prepped_nz))
    ref_nz = resblock_reference(x, emb, ctx, params_nz)
    assert jnp.allclose(out_nz, ref_nz, atol=5e-2, rtol=5e-2), "mismatch (non-zero out-layer)"

    print("KERNEL_OK")
</pallas_src>

<mosaic_0001>
module attributes {stable_mosaic.version = 11 : i64} {
  func.func @resblock_kernel(%arg0: i32, %arg1: memref<8x128xf32, #tpu.memory_space<vmem>>, %arg2: memref<8x128xbf16, #tpu.memory_space<vmem>>, %arg3: memref<8x128xbf16, #tpu.memory_space<vmem>>, %arg4: memref<1x128xf32, #tpu.memory_space<vmem>>, %arg5: memref<1x128xf32, #tpu.memory_space<vmem>>, %arg6: memref<128x128xbf16, #tpu.memory_space<vmem>>, %arg7: memref<128x128xbf16, #tpu.memory_space<vmem>>, %arg8: memref<128x128xbf16, #tpu.memory_space<vmem>>, %arg9: memref<1x128xf32, #tpu.memory_space<vmem>>, %arg10: memref<1x128xf32, #tpu.memory_space<vmem>>, %arg11: memref<1x128xf32, #tpu.memory_space<vmem>>, %arg12: memref<128x128xbf16, #tpu.memory_space<vmem>>, %arg13: memref<1x128xf32, #tpu.memory_space<vmem>>, %arg14: memref<8x128xf32, #tpu.memory_space<vmem>>) attributes {dimension_semantics = [#tpu.dimension_semantics<parallel>], iteration_bounds = array<i64: 2>, scalar_prefetch = 0 : i64, scratch_operands = 0 : i64, tpu.core_type = #tpu.core_type<tc>, window_params = [{transform_indices = @transform_0, window_bounds = array<i64: 8, 128>}, {transform_indices = @transform_1, window_bounds = array<i64: 8, 128>}, {transform_indices = @transform_2, window_bounds = array<i64: 8, 128>}, {pipeline_mode = #tpu.pipeline_mode<synchronous>, transform_indices = @transform_3, window_bounds = array<i64: 1, 128>}, {pipeline_mode = #tpu.pipeline_mode<synchronous>, transform_indices = @transform_4, window_bounds = array<i64: 1, 128>}, {pipeline_mode = #tpu.pipeline_mode<synchronous>, transform_indices = @transform_5, window_bounds = array<i64: 128, 128>}, {pipeline_mode = #tpu.pipeline_mode<synchronous>, transform_indices = @transform_6, window_bounds = array<i64: 128, 128>}, {pipeline_mode = #tpu.pipeline_mode<synchronous>, transform_indices = @transform_7, window_bounds = array<i64: 128, 128>}, {pipeline_mode = #tpu.pipeline_mode<synchronous>, transform_indices = @transform_8, window_bounds = array<i64: 1, 128>}, {pipeline_mode = #tpu.pipeline_mode<synchronous>, transform_indices = @transform_9, window_bounds = array<i64: 1, 128>}, {pipeline_mode = #tpu.pipeline_mode<synchronous>, transform_indices = @transform_10, window_bounds = array<i64: 1, 128>}, {pipeline_mode = #tpu.pipeline_mode<synchronous>, transform_indices = @transform_11, window_bounds = array<i64: 128, 128>}, {pipeline_mode = #tpu.pipeline_mode<synchronous>, transform_indices = @transform_12, window_bounds = array<i64: 1, 128>}, {transform_indices = @transform_13, window_bounds = array<i64: 8, 128>}]} {
    %c0 = arith.constant 0 : index
    %c0_0 = arith.constant 0 : index
    %0 = vector.load %arg1[%c0, %c0_0] : memref<8x128xf32, #tpu.memory_space<vmem>>, vector<8x128xf32>
    %c0_1 = arith.constant 0 : index
    %c0_2 = arith.constant 0 : index
    %1 = vector.load %arg4[%c0_1, %c0_2] : memref<1x128xf32, #tpu.memory_space<vmem>>, vector<1x128xf32>
    %c0_3 = arith.constant 0 : index
    %c0_4 = arith.constant 0 : index
    %2 = vector.load %arg5[%c0_3, %c0_4] : memref<1x128xf32, #tpu.memory_space<vmem>>, vector<1x128xf32>
    %cst = arith.constant dense<0.000000e+00> : vector<8xf32>
    %3 = vector.multi_reduction <add>, %0, %cst [1] : vector<8x128xf32> to vector<8xf32>
    %4 = vector.shape_cast %3 : vector<8xf32> to vector<8x1xf32>
    %cst_5 = arith.constant 3.125000e-02 : f32
    %5 = vector.broadcast %cst_5 : f32 to vector<8x1xf32>
    %6 = arith.mulf %4, %5 : vector<8x1xf32>
    %7 = arith.mulf %0, %0 : vector<8x128xf32>
    %cst_6 = arith.constant dense<0.000000e+00> : vector<8xf32>
    %8 = vector.multi_reduction <add>, %7, %cst_6 [1] : vector<8x128xf32> to vector<8xf32>
    %9 = vector.shape_cast %8 : vector<8xf32> to vector<8x1xf32>
    %cst_7 = arith.constant 3.125000e-02 : f32
    %10 = vector.broadcast %cst_7 : f32 to vector<8x1xf32>
    %11 = arith.mulf %9, %10 : vector<8x1xf32>
    %12 = arith.mulf %6, %6 : vector<8x1xf32>
    %13 = arith.subf %11, %12 : vector<8x1xf32>
    %cst_8 = arith.constant 0.000000e+00 : f32
    %14 = vector.broadcast %cst_8 : f32 to vector<8x1xf32>
    %15 = arith.maximumf %13, %14 : vector<8x1xf32>
    %16 = vector.broadcast %6 : vector<8x1xf32> to vector<8x128xf32>
    %17 = arith.subf %0, %16 : vector<8x128xf32>
    %cst_9 = arith.constant 9.99999974E-6 : f32
    %18 = vector.broadcast %cst_9 : f32 to vector<8x1xf32>
    %19 = arith.addf %15, %18 : vector<8x1xf32>
    %20 = math.rsqrt %19 : vector<8x1xf32>
    %21 = vector.broadcast %20 : vector<8x1xf32> to vector<8x128xf32>
    %22 = arith.mulf %17, %21 : vector<8x128xf32>
    %23 = vector.broadcast %1 : vector<1x128xf32> to vector<8x128xf32>
    %24 = arith.mulf %22, %23 : vector<8x128xf32>
    %25 = vector.broadcast %2 : vector<1x128xf32> to vector<8x128xf32>
    %26 = arith.addf %24, %25 : vector<8x128xf32>
    %27 = arith.negf %26 : vector<8x128xf32>
    %28 = math.exp %27 : vector<8x128xf32>
    %cst_10 = arith.constant 1.000000e+00 : f32
    %29 = vector.broadcast %cst_10 : f32 to vector<8x128xf32>
    %30 = arith.addf %29, %28 : vector<8x128xf32>
    %31 = arith.divf %29, %30 : vector<8x128xf32>
    %32 = arith.mulf %26, %31 : vector<8x128xf32>
    %c0_11 = arith.constant 0 : index
    %c0_12 = arith.constant 0 : index
    %33 = vector.load %arg2[%c0_11, %c0_12] : memref<8x128xbf16, #tpu.memory_space<vmem>>, vector<8x128xbf16>
    %34 = arith.extf %33 : vector<8x128xbf16> to vector<8x128xf32>
    %35 = arith.negf %34 : vector<8x128xf32>
    %36 = math.exp %35 : vector<8x128xf32>
    %cst_13 = arith.constant 1.000000e+00 : f32
    %37 = vector.broadcast %cst_13 : f32 to vector<8x128xf32>
    %38 = arith.addf %37, %36 : vector<8x128xf32>
    %39 = arith.divf %37, %38 : vector<8x128xf32>
    %40 = arith.mulf %34, %39 : vector<8x128xf32>
    %c0_14 = arith.constant 0 : index
    %c0_15 = arith.constant 0 : index
    %41 = vector.load %arg3[%c0_14, %c0_15] : memref<8x128xbf16, #tpu.memory_space<vmem>>, vector<8x128xbf16>
    %42 = arith.extf %41 : vector<8x128xbf16> to vector<8x128xf32>
    %43 = arith.negf %42 : vector<8x128xf32>
    %44 = math.exp %43 : vector<8x128xf32>
    %cst_16 = arith.constant 1.000000e+00 : f32
    %45 = vector.broadcast %cst_16 : f32 to vector<8x128xf32>
    %46 = arith.addf %45, %44 : vector<8x128xf32>
    %47 = arith.divf %45, %46 : vector<8x128xf32>
    %48 = arith.mulf %42, %47 : vector<8x128xf32>
    %49 = arith.truncf %32 : vector<8x128xf32> to vector<8x128xbf16>
    %c0_17 = arith.constant 0 : index
    %c0_18 = arith.constant 0 : index
    %50 = vector.load %arg6[%c0_17, %c0_18] : memref<128x128xbf16, #tpu.memory_space<vmem>>, vector<128x128xbf16>
    %cst_19 = arith.constant dense<0.000000e+00> : vector<8x128xf32>
    %51 = tpu.matmul %49, %50, %cst_19 {dimension_numbers = #tpu.dot_dimension_numbers<[1], [0], [0], [1], [0, 0, 1, 1], [], []>} : vector<8x128xbf16>, vector<128x128xbf16>, vector<8x128xf32> -> vector<8x128xf32>
    %52 = arith.truncf %40 : vector<8x128xf32> to vector<8x128xbf16>
    %c0_20 = arith.constant 0 : index
    %c0_21 = arith.constant 0 : index
    %53 = vector.load %arg7[%c0_20, %c0_21] : memref<128x128xbf16, #tpu.memory_space<vmem>>, vector<128x128xbf16>
    %cst_22 = arith.constant dense<0.000000e+00> : vector<8x128xf32>
    %54 = tpu.matmul %52, %53, %cst_22 {dimension_numbers = #tpu.dot_dimension_numbers<[1], [0], [0], [1], [0, 0, 1, 1], [], []>} : vector<8x128xbf16>, vector<128x128xbf16>, vector<8x128xf32> -> vector<8x128xf32>
    %55 = arith.addf %51, %54 : vector<8x128xf32>
    %56 = arith.truncf %48 : vector<8x128xf32> to vector<8x128xbf16>
    %c0_23 = arith.constant 0 : index
    %c0_24 = arith.constant 0 : index
    %57 = vector.load %arg8[%c0_23, %c0_24] : memref<128x128xbf16, #tpu.memory_space<vmem>>, vector<128x128xbf16>
    %cst_25 = arith.constant dense<0.000000e+00> : vector<8x128xf32>
    %58 = tpu.matmul %56, %57, %cst_25 {dimension_numbers = #tpu.dot_dimension_numbers<[1], [0], [0], [1], [0, 0, 1, 1], [], []>} : vector<8x128xbf16>, vector<128x128xbf16>, vector<8x128xf32> -> vector<8x128xf32>
    %59 = arith.addf %55, %58 : vector<8x128xf32>
    %c0_26 = arith.constant 0 : index
    %c0_27 = arith.constant 0 : index
    %60 = vector.load %arg9[%c0_26, %c0_27] : memref<1x128xf32, #tpu.memory_space<vmem>>, vector<1x128xf32>
    %61 = vector.broadcast %60 : vector<1x128xf32> to vector<8x128xf32>
    %62 = arith.addf %59, %61 : vector<8x128xf32>
    %c0_28 = arith.constant 0 : index
    %c0_29 = arith.constant 0 : index
    %63 = vector.load %arg10[%c0_28, %c0_29] : memref<1x128xf32, #tpu.memory_space<vmem>>, vector<1x128xf32>
    %c0_30 = arith.constant 0 : index
    %c0_31 = arith.constant 0 : index
    %64 = vector.load %arg11[%c0_30, %c0_31] : memref<1x128xf32, #tpu.memory_space<vmem>>, vector<1x128xf32>
    %cst_32 = arith.constant dense<0.000000e+00> : vector<8xf32>
    %65 = vector.multi_reduction <add>, %62, %cst_32 [1] : vector<8x128xf32> to vector<8xf32>
    %66 = vector.shape_cast %65 : vector<8xf32> to vector<8x1xf32>
    %cst_33 = arith.constant 1.562500e-02 : f32
    %67 = vector.broadcast %cst_33 : f32 to vector<8x1xf32>
    %68 = arith.mulf %66, %67 : vector<8x1xf32>
    %69 = arith.mulf %62, %62 : vector<8x128xf32>
    %cst_34 = arith.constant dense<0.000000e+00> : vector<8xf32>
    %70 = vector.multi_reduction <add>, %69, %cst_34 [1] : vector<8x128xf32> to vector<8xf32>
    %71 = vector.shape_cast %70 : vector<8xf32> to vector<8x1xf32>
    %cst_35 = arith.constant 1.562500e-02 : f32
    %72 = vector.broadcast %cst_35 : f32 to vector<8x1xf32>
    %73 = arith.mulf %71, %72 : vector<8x1xf32>
    %74 = arith.mulf %68, %68 : vector<8x1xf32>
    %75 = arith.subf %73, %74 : vector<8x1xf32>
    %cst_36 = arith.constant 0.000000e+00 : f32
    %76 = vector.broadcast %cst_36 : f32 to vector<8x1xf32>
    %77 = arith.maximumf %75, %76 : vector<8x1xf32>
    %78 = vector.broadcast %68 : vector<8x1xf32> to vector<8x128xf32>
    %79 = arith.subf %62, %78 : vector<8x128xf32>
    %cst_37 = arith.constant 9.99999974E-6 : f32
    %80 = vector.broadcast %cst_37 : f32 to vector<8x1xf32>
    %81 = arith.addf %77, %80 : vector<8x1xf32>
    %82 = math.rsqrt %81 : vector<8x1xf32>
    %83 = vector.broadcast %82 : vector<8x1xf32> to vector<8x128xf32>
    %84 = arith.mulf %79, %83 : vector<8x128xf32>
    %85 = vector.broadcast %63 : vector<1x128xf32> to vector<8x128xf32>
    %86 = arith.mulf %84, %85 : vector<8x128xf32>
    %87 = vector.broadcast %64 : vector<1x128xf32> to vector<8x128xf32>
    %88 = arith.addf %86, %87 : vector<8x128xf32>
    %89 = arith.negf %88 : vector<8x128xf32>
    %90 = math.exp %89 : vector<8x128xf32>
    %cst_38 = arith.constant 1.000000e+00 : f32
    %91 = vector.broadcast %cst_38 : f32 to vector<8x128xf32>
    %92 = arith.addf %91, %90 : vector<8x128xf32>
    %93 = arith.divf %91, %92 : vector<8x128xf32>
    %94 = arith.mulf %88, %93 : vector<8x128xf32>
    %95 = arith.truncf %94 : vector<8x128xf32> to vector<8x128xbf16>
    %c0_39 = arith.constant 0 : index
    %c0_40 = arith.constant 0 : index
    %96 = vector.load %arg12[%c0_39, %c0_40] : memref<128x128xbf16, #tpu.memory_space<vmem>>, vector<128x128xbf16>
    %cst_41 = arith.constant dense<0.000000e+00> : vector<8x128xf32>
    %97 = tpu.matmul %95, %96, %cst_41 {dimension_numbers = #tpu.dot_dimension_numbers<[1], [0], [0], [1], [0, 0, 1, 1], [], []>} : vector<8x128xbf16>, vector<128x128xbf16>, vector<8x128xf32> -> vector<8x128xf32>
    %c0_42 = arith.constant 0 : index
    %c0_43 = arith.constant 0 : index
    %98 = vector.load %arg13[%c0_42, %c0_43] : memref<1x128xf32, #tpu.memory_space<vmem>>, vector<1x128xf32>
    %99 = vector.broadcast %98 : vector<1x128xf32> to vector<8x128xf32>
    %100 = arith.addf %97, %99 : vector<8x128xf32>
    %101 = arith.addf %0, %100 : vector<8x128xf32>
    %c0_44 = arith.constant 0 : index
    %c0_45 = arith.constant 0 : index
    %102 = vector.load %arg14[%c0_44, %c0_45] : memref<8x128xf32, #tpu.memory_space<vmem>>, vector<8x128xf32>
    tpu.vector_store %arg14[%c0_44, %c0_45], %101 {strides = array<i32>} : memref<8x128xf32, #tpu.memory_space<vmem>>, vector<8x128xf32>,
    return
  }
  func.func @transform_0(%arg0: i32) -> (i32, i32) {
    %c0_i32 = arith.constant 0 : i32
    %c0_i32_0 = arith.constant 0 : i32
    return %arg0, %c0_i32 : i32, i32
  }
  func.func @transform_1(%arg0: i32) -> (i32, i32) {
    %c0_i32 = arith.constant 0 : i32
    %c0_i32_0 = arith.constant 0 : i32
    return %arg0, %c0_i32 : i32, i32
  }
  func.func @transform_2(%arg0: i32) -> (i32, i32) {
    %c0_i32 = arith.constant 0 : i32
    %c0_i32_0 = arith.constant 0 : i32
    return %arg0, %c0_i32 : i32, i32
  }
  func.func @transform_3(%arg0: i32) -> (i32, i32) {
    %c0_i32 = arith.constant 0 : i32
    %c0_i32_0 = arith.constant 0 : i32
    %c0_i32_1 = arith.constant 0 : i32
    return %c0_i32, %c0_i32_0 : i32, i32
  }
  func.func @transform_4(%arg0: i32) -> (i32, i32) {
    %c0_i32 = arith.constant 0 : i32
    %c0_i32_0 = arith.constant 0 : i32
    %c0_i32_1 = arith.constant 0 : i32
    return %c0_i32, %c0_i32_0 : i32, i32
  }
  func.func @transform_5(%arg0: i32) -> (i32, i32) {
    %c0_i32 = arith.constant 0 : i32
    %c0_i32_0 = arith.constant 0 : i32
    %c0_i32_1 = arith.constant 0 : i32
    return %c0_i32, %c0_i32_0 : i32, i32
  }
  func.func @transform_6(%arg0: i32) -> (i32, i32) {
    %c0_i32 = arith.constant 0 : i32
    %c0_i32_0 = arith.constant 0 : i32
    %c0_i32_1 = arith.constant 0 : i32
    return %c0_i32, %c0_i32_0 : i32, i32
  }
  func.func @transform_7(%arg0: i32) -> (i32, i32) {
    %c0_i32 = arith.constant 0 : i32
    %c0_i32_0 = arith.constant 0 : i32
    %c0_i32_1 = arith.constant 0 : i32
    return %c0_i32, %c0_i32_0 : i32, i32
  }
  func.func @transform_8(%arg0: i32) -> (i32, i32) {
    %c0_i32 = arith.constant 0 : i32
    %c0_i32_0 = arith.constant 0 : i32
    %c0_i32_1 = arith.constant 0 : i32
    return %c0_i32, %c0_i32_0 : i32, i32
  }
  func.func @transform_9(%arg0: i32) -> (i32, i32) {
    %c0_i32 = arith.constant 0 : i32
    %c0_i32_0 = arith.constant 0 : i32
    %c0_i32_1 = arith.constant 0 : i32
    return %c0_i32, %c0_i32_0 : i32, i32
  }
  func.func @transform_10(%arg0: i32) -> (i32, i32) {
    %c0_i32 = arith.constant 0 : i32
    %c0_i32_0 = arith.constant 0 : i32
    %c0_i32_1 = arith.constant 0 : i32
    return %c0_i32, %c0_i32_0 : i32, i32
  }
  func.func @transform_11(%arg0: i32) -> (i32, i32) {
    %c0_i32 = arith.constant 0 : i32
    %c0_i32_0 = arith.constant 0 : i32
    %c0_i32_1 = arith.constant 0 : i32
    return %c0_i32, %c0_i32_0 : i32, i32
  }
  func.func @transform_12(%arg0: i32) -> (i32, i32) {
    %c0_i32 = arith.constant 0 : i32
    %c0_i32_0 = arith.constant 0 : i32
    %c0_i32_1 = arith.constant 0 : i32
    return %c0_i32, %c0_i32_0 : i32, i32
  }
  func.func @transform_13(%arg0: i32) -> (i32, i32) {
    %c0_i32 = arith.constant 0 : i32
    %c0_i32_0 = arith.constant 0 : i32
    return %arg0, %c0_i32 : i32, i32
  }
}

</mosaic_0001>

<bundles_post_ra>
// kernel: tpu_custom_call.1
= control target key start
LH: loop header
LB: loop body
LE: loop exit
PB: predicated region body
PF: predicated region fallthrough
CT: control target
= control target key end

     0   :  { %s2216_s0 = inlined_call_operand.hbm [shape: f32[16,128], index: 0, kind: input, shape index: {}]   ;;  %s2217_s1 = inlined_call_operand.hbm [shape: bf16[16,128], index: 1, kind: input, shape index: {}]   ;;  %s2218_s2 = inlined_call_operand.hbm [shape: bf16[16,128], index: 2, kind: input, shape index: {}]   ;;  %s2219_s3 = inlined_call_operand.vmem [shape: f32[1,128], index: 3, kind: input, shape index: {}]   ;;  %s2220_s4 = inlined_call_operand.vmem [shape: f32[1,128], index: 4, kind: input, shape index: {}]   ;;  %s2221_s5 = inlined_call_operand.hbm [shape: bf16[128,128], index: 5, kind: input, shape index: {}]   ;;  %s2222_s6 = inlined_call_operand.hbm [shape: bf16[128,128], index: 6, kind: input, shape index: {}]   ;;  %s2223_s7 = inlined_call_operand.hbm [shape: bf16[128,128], index: 7, kind: input, shape index: {}]   ;;  %s2224_s8 = inlined_call_operand.vmem [shape: f32[1,128], index: 8, kind: input, shape index: {}]   ;;  %s2225_s9 = inlined_call_operand.vmem [shape: f32[1,128], index: 9, kind: input, shape index: {}]   ;;  %s2226_s10 = inlined_call_operand.vmem [shape: f32[1,128], index: 10, kind: input, shape index: {}]   ;;  %s2227_s11 = inlined_call_operand.hbm [shape: bf16[128,128], index: 11, kind: input, shape index: {}]   ;;  %s2228_s12 = inlined_call_operand.vmem [shape: f32[1,128], index: 12, kind: input, shape index: {}]   ;;  %s2229_s13 = inlined_call_operand.hbm [shape: f32[16,128], index: 13, kind: output, shape index: {}]  }
   0x1   :  { %2244 = sst [smem:[#allocation26_spill]] %s2217_s1 }
   0x2   :  { %2245 = sst [smem:[#allocation27_spill]] %s2221_s5 }
   0x3   :  { %2246 = sst [smem:[#allocation28_spill]] %s2222_s6 }
   0x4   :  { %2247 = sst [smem:[#allocation29_spill]] %s2223_s7 }
   0x5   :  { %2248 = sst [smem:[#allocation30_spill]] %s2225_s9 }
   0x6   :  { %2249 = sst [smem:[#allocation31_spill]] %s2226_s10 }
   0x7   :  { %2250 = sst [smem:[#allocation32_spill]] %s2227_s11 }
   0x8   :  { %2251 = sst [smem:[#allocation33_spill]] %s2228_s12 }
   0x9   :  { %2252 = sst [smem:[#allocation34_spill]] %s2229_s13 }
   0xa   :  { %18 = vsyncpa [#allocation3], 0 }
   0xb   :  { %20 = vsyncpa [#allocation3 + $0x1], 0 }
   0xc   :  { %21 = vsyncpa [#allocation6], 0 }
   0xd   :  { %23 = vsyncpa [#allocation6 + $0x1], 0 }
   0xe   :  { %24 = vsyncpa [#allocation9], 0 }
   0xf   :  { %25 = vsyncpa [#allocation12], 0 }
  0x10   :  { %26 = vsyncpa [#allocation4], 0 }
  0x11   :  { %28 = vsyncpa [#allocation4 + $0x1], 0  ;;  %s1922_s25 = smov 0   ;;  %s1924_s26 = smov 0  }
  0x12   :  { %s1926_s27 = smov 0   ;;  %s1928_s28 = smov 0  }
  0x13 LB: > { %2253 = sst [smem:[#allocation20_spill]] %s1832_s25  ;;  %s1946_s15 = sadd.s32 4294967295, %s1844_s28   ;;  %s1844_s28 = sphi %s1928_s28, %s2289_s28   ;;  %s1840_s27 = sphi %s1926_s27, %s2291_s27   ;;  %s1836_s26 = sphi %s1924_s26, %s2293_s26   ;;  %s1832_s25 = sphi %s1922_s25, %s2292_s25  }
  0x14   : > { %2254 = sst [smem:[#allocation21_spill]] %s1840_s27  ;;  %p1242_p0 = scmp.ge.s32.totalorder %s1844_s28, 1 }
  0x15   : > { %s2255_s5 = sld [smem:[#allocation27_spill]]  ;;  %p2242_p1 = scmp.eq.s32.totalorder %s1946_s15, 0 }
  0x16   : > { %p353_p2 = scmp.lt.s32.totalorder %s1844_s28, 3  ;;  %s1846_s17 = smov [#allocation8]  }
  0x17   : > { %s372_s18 = sshll.u32 %s1846_s17, 4  ;;  %s2257_s7 = sld [smem:[#allocation29_spill]]  ;;  %s373_s18 = int_to_ptr.vmem [resolvable:$true] %s372_s18 }
  0x18   : > { %p1951_p3 = pnand %p1242_p0, %p353_p2  ;;  %s1847_s23 = smov [#allocation11]  }
  0x19   : > { %s400_s24 = sshll.u32 %s1847_s23, 4  ;;  %s2230_s29 = smov 64   ;;  %s401_s24 = int_to_ptr.vmem [resolvable:$true] %s400_s24 }
  0x1a   : > { %p1455_p4 = pneg %p1951_p3  ;;  %s2232_s30 = smov 4  }
  0x1b   : > { %s370_s14 = sshll.u32 %s2255_s5, 4  ;;  %s1241_s17 = sadd.s32 4294967294, %s1844_s28   ;;  %s371_s14 = int_to_ptr.hbm [resolvable:$true] %s370_s14 }
  0x1c   : > { %p1963_p6 = pnand %p1455_p4, %p2242_p1  ;;  %s1979_s19 = sadd.s32 1, %s1844_s28  }
  0x1d   : > { %s398_s21 = sshll.u32 %s2257_s7, 4  ;;  %2259 = sst [smem:[#allocation22_spill]] %s1979_s19  ;;  %s399_s21 = int_to_ptr.hbm [resolvable:$true] %s398_s21 }
  0x1e   : > { %1458 = dma.hbm_to_vmem [thread:$0]  (!%p1963_p6), %s371_s14, 1024, %s373_s18, [#allocation9], %s2230_s29, %s2230_s29, %s2232_s30  }
  0x1f   : > { %1464 = dma.hbm_to_vmem [thread:$0]  (!%p1963_p6), %s399_s21, 1024, %s401_s24, [#allocation12], %s2230_s29, %s2230_s29, %s2232_s30  }
  0x20   : > { %s38_s20 = ssub.s32 %s1844_s28, %s1979_s19  ;;  %s41_s23 = sadd.s32 1, %s1840_s27 }
  0x21   : > { %p39_p7 = scmp.eq.s32.totalorder %s38_s20, 0  ;;  %p48_p8 = scmp.ne.s32.totalorder %s1840_s27, %s1836_s26 }
  0x22   : > { %p49_p9 = scmp.eq.s32.totalorder %s1844_s28, 0  ;;  %p54_p10 = scmp.ne.s32.totalorder %s1836_s26, %s1832_s25 }
  0x23   : > { %s1990_s14 = scalar_select %p39_p7, %s1840_s27, %s41_s23  }
  0x24   : > { %p50_p11 = por %p49_p9, %p48_p8  ;;  %p1994_p12 = por %p2242_p1, %p54_p10 }
  0x25   : > { %2260 = sst [smem:[#allocation23_spill]] %s1990_s14  ;;  %p340_p13 = scmp.eq.s32.totalorder %s1946_s15, 1 }
  0x26   : > { %p346_p0 = scmp.eq.s32.totalorder %s1241_s17, 1  ;;  %p1486_p2 = scmp.lt.s32.totalorder %s1844_s28, 2 }
  0x27   : > { %s2001_s21 = sand.u32 1, %s1840_s27   ;;  %p2003_p4 = por %p340_p13, %p48_p8 }
  0x28   : > { %p2007_p5 = por %p346_p0, %p54_p10  ;;  %p2011_p7 = pnand %p1486_p2, %p50_p11 }
  0x29   : > { %s2262_s24 = scalar_select %p2003_p4, 1, 0 }
  0x2a   : > { %s2264_s20 = scalar_select %p2007_p5, 1, 0 }
  0x2b   : > { %2263 = sst [smem:[#allocation24_spill]] %s2262_s24  ;;  %s459_s29 = sand.u32 1, %s1844_s28  }
  0x2c   : > { %2265 = sst [smem:[#allocation25_spill]] %s2264_s20  ;;  %s2243_s17 = sshll.u32 %s2001_s21, 2 }
  0x2d   : > { %s1251_s30 = sshll.u32 %s1844_s28, 2  ;;  %s463_s5 = scalar_lea.vmem [#allocation5], %s2243_s17 }
  0x2e   : > { %s471_s7 = sshll.u32 %s463_s5, 4  ;;  %s2267_s1 = sld [smem:[#allocation26_spill]]  ;;  %s472_s7 = int_to_ptr.vmem [resolvable:$true] %s471_s7 }
  0x2f   : > { %s2026_s13 = scalar_lea.hbm %s2218_s2, %s1251_s30  ;;  %s2028_s12 = scalar_lea.sflag [#allocation6], %s459_s29 }
  0x30   : > { %p1620_p9 = pneg %p2011_p7 }
  0x34   : > { %s467_s19 = scalar_lea.hbm %s2267_s1, %s1251_s30 }
  0x35   : > { %s469_s25 = sshll.u32 %s467_s19, 4  ;;  %s1623_s19 = scalar_lea.hbm %s2267_s1, 8  ;;  %s470_s25 = int_to_ptr.hbm [resolvable:$true] %s469_s25 }
  0x36   : > { %s1616_s10 = sshra.s32 %s470_s25, 4  ;;  %s1617_s10 = int_to_ptr.hbm [resolvable:$true] %s1616_s10 }
  0x37   : > { %s1618_s9 = scalar_lea.hbm %s1617_s10, 4  ;;  %p1624_p13 = scmp.lt.s32.totalorder %s1617_s10, %s2267_s1 }
  0x38   : > { %p1619_p8 = scmp.ne.s32.totalorder %s1617_s10, %s1618_s9  ;;  %p1625_p0 = scmp.lt.s32.totalorder %s1623_s19, %s1618_s9 }
  0x3a   : > { %p1621_p10 = pnand %p1620_p9, %p1619_p8  ;;  %p1626_p2 = por %p1625_p0, %p1624_p13 }
  0x3c   : > { %p1622_p11 = pneg %p1621_p10 }
  0x3e   : > { %p1627_p1 = pnand %p1626_p2, %p1622_p11 }
  0x40   : > { %1630 = shalt.err (!%p1627_p1)
}
  0x41   : > { %1474 = dma.hbm_to_vmem [thread:$0]  (!%p2011_p7), %s470_s25, 64, %s472_s7, %s2028_s12  }
  0x42   : > { %s2268_s6 = sld [smem:[#allocation28_spill]]  ;;  %s1850_s5 = smov [#allocation10]  }
  0x43   : > { %s386_s27 = sshll.u32 %s1850_s5, 4  ;;  %s2269_s11 = sld [smem:[#allocation32_spill]]  ;;  %s387_s27 = int_to_ptr.vmem [resolvable:$true] %s386_s27 }
  0x44   : > { %s2270_s14 = smov 4   ;;  %s2271_s24 = smov 64  }
  0x45   : > { %s1851_s7 = smov [#allocation13]   ;;  %s1248_s29 = sshll.u32 %s2001_s21, 3 }
  0x46   : > { %s423_s25 = sshll.u32 %s1851_s7, 4  ;;  %s1249_s30 = sshll.u32 %s1844_s28, 3  ;;  %s424_s25 = int_to_ptr.vmem [resolvable:$true] %s423_s25 }
  0x47   : > { %s448_s10 = scalar_lea.hbm %s2216_s0, %s1249_s30  ;;  %s444_s17 = scalar_lea.vmem [#allocation2], %s1248_s29 }
  0x48   : > { %s384_s20 = sshll.u32 %s2268_s6, 4  ;;  %s452_s1 = sshll.u32 %s444_s17, 4  ;;  %s385_s20 = int_to_ptr.hbm [resolvable:$true] %s384_s20  ;;  %s453_s1 = int_to_ptr.vmem [resolvable:$true] %s452_s1 }
  0x49   : > { %s421_s19 = sshll.u32 %s2269_s11, 4  ;;  %s450_s6 = sshll.u32 %s448_s10, 4  ;;  %s422_s19 = int_to_ptr.hbm [resolvable:$true] %s421_s19  ;;  %s451_s6 = int_to_ptr.hbm [resolvable:$true] %s450_s6 }
  0x4a   : > { %1461 = dma.hbm_to_vmem [thread:$0]  (!%p1963_p6), %s385_s20, 1024, %s387_s27, [#allocation9], %s2271_s24, %s2271_s24, %s2270_s14  }
  0x4b   : > { %1467 = dma.hbm_to_vmem [thread:$0]  (!%p1963_p6), %s422_s19, 1024, %s424_s25, [#allocation12], %s2271_s24, %s2271_s24, %s2270_s14  }
  0x4c   : > { %s488_s20 = sshll.u32 %s2026_s13, 4  ;;  %s441_s27 = scalar_lea.sflag [#allocation3], %s2001_s21  ;;  %s489_s20 = int_to_ptr.hbm [resolvable:$true] %s488_s20 }
  0x4d   : > { %s1706_s7 = sshra.s32 %s451_s6, 4  ;;  %s1713_s14 = scalar_lea.hbm %s2216_s0, 16  ;;  %s1707_s7 = int_to_ptr.hbm [resolvable:$true] %s1706_s7 }
  0x4e   : > { %s1708_s11 = scalar_lea.hbm %s1707_s7, 8  ;;  %p1714_p10 = scmp.lt.s32.totalorder %s1707_s7, %s2216_s0 }
  0x4f   : > { %p1709_p1 = scmp.ne.s32.totalorder %s1707_s7, %s1708_s11  ;;  %p1715_p11 = scmp.lt.s32.totalorder %s1713_s14, %s1708_s11 }
  0x51   : > { %p1711_p8 = pnand %p1709_p1, %p1620_p9  ;;  %p1716_p13 = por %p1715_p11, %p1714_p10 }
  0x53   : > { %p1712_p6 = pneg %p1711_p8 }
  0x55   : > { %p1717_p0 = pnand %p1716_p13, %p1712_p6 }
  0x57   : > { %1720 = shalt.err (!%p1717_p0)
}
  0x58   : > { %1471 = dma.hbm_to_vmem [thread:$0]  (!%p2011_p7), %s451_s6, 128, %s453_s1, %s441_s27  }
  0x59   : > { %s2272_s13 = sshll.u32 %s2001_s21, 2  ;;  %s1736_s30 = sshra.s32 %s489_s20, 4  ;;  %s1737_s30 = int_to_ptr.hbm [resolvable:$true] %s1736_s30 }
  0x5a   : > { %s482_s17 = scalar_lea.vmem [#allocation7], %s2272_s13  ;;  %s1738_s5 = scalar_lea.hbm %s1737_s30, 4 }
  0x5b   : > { %s490_s29 = sshll.u32 %s482_s17, 4  ;;  %p1739_p2 = scmp.ne.s32.totalorder %s1737_s30, %s1738_s5  ;;  %s491_s29 = int_to_ptr.vmem [resolvable:$true] %s490_s29 }
  0x5c   : > { %s1743_s10 = scalar_lea.hbm %s2218_s2, 8  ;;  %p1744_p6 = scmp.lt.s32.totalorder %s1737_s30, %s2218_s2 }
  0x5d   : > { %p1741_p1 = pnand %p1739_p2, %p1620_p9  ;;  %p1745_p10 = scmp.lt.s32.totalorder %s1743_s10, %s1738_s5 }
  0x5f   : > { %p1742_p8 = pneg %p1741_p1  ;;  %p1746_p11 = por %p1745_p10, %p1744_p6 }
  0x61   : > { %p1747_p13 = pnand %p1746_p11, %p1742_p8 }
  0x63   : > { %1750 = shalt.err (!%p1747_p13)
}
  0x64   : > { %1477 = dma.hbm_to_vmem [thread:$0]  (!%p2011_p7), %s489_s20, 64, %s491_s29, %s2028_s12  }
  0x65   : > { %499 = sbr.rel (%p1951_p3) target bundleno = 765 (0x2fd), region = 72  ;;  %s2095_s1 = sand.u32 (!%p1951_p3), 1, %s1836_s26  }
  0x66   : > { %s1255_s6 = sshll.u32 (!%p1951_p3), %s2095_s1, 3  ;;  %s502_s21 = scalar_lea.sflag (!%p1951_p3), [#allocation3], %s2095_s1 }
  0x67   : > { %s505_s27 = scalar_lea.vmem (!%p1951_p3), [#allocation2], %s1255_s6 }
  0x6a   : > { %1811 = dma.done.wait (%p1994_p12), %s502_s21, 128  }
  0x6b   : > { %1813 = vsyncadd (%p1994_p12), %s502_s21, 4294967168  ;;  %s511_s12 = sand.u32 1, %s1946_s15   ;;  %s1256_s16 = sshll.u32 %s2095_s1, 2 }
  0x6c   : > { %s512_s23 = scalar_lea.sflag [#allocation6], %s511_s12  ;;  %s515_s20 = scalar_lea.vmem [#allocation5], %s1256_s16 }
  0x6d   : > { %1815 = dma.done.wait (%p1994_p12), %s512_s23, 128  }
  0x6e   : > { %1817 = vsyncadd (%p1994_p12), %s512_s23, 4294967168  ;;  %s525_s19 = scalar_lea.vmem [#allocation7], %s1256_s16  ;;  %p2273_p3 = scmp.eq.s32.totalorder %s1946_s15, 0 }
  0x70   : > { %1819 = dma.done.wait (%p2273_p3), [#allocation9], 2048   ;;  %p2274_p7 = pmov %p2273_p3 }
  0x71   : > { %p2275_p9 = pmov %p2273_p3 }
  0x72   : > { %1821 = vsyncadd (%p2274_p7), [#allocation9], 4294965248 }
  0x73   : > { %1823 = dma.done.wait (%p2275_p9), [#allocation12], 2048   ;;  %p2276_p0 = pmov %p2273_p3 }
  0x74   : > { %v2119_v0 = vld [vmem:[%s505_s27] sm:$0xff]  ;;  %v2124_v2 = vld [vmem:[%s525_s19] sm:$0xf]  ;;  %v2129_v6 = vld [vmem:[%s515_s20] sm:$0xf]  ;;  %s2281_s5 = sld [smem:[#allocation30_spill]] }
  0x75   : > { %1825 = vsyncadd (%p2276_p0), [#allocation12], 4294965248  ;;  %602 = vadd.xlane.f32.xlu0 %v2119_v0  ;;  %v605_v1 = vmul.f32 %v2119_v0, %v2119_v0  ;;  %v676_v3 = vunpack.c.l.bf16 %v2124_v2  ;;  %v1422_v4 = vld [vmem:[#allocation11 + $0x38] sm:$0xff]  ;;  %v654_v7 = vunpack.c.l.bf16 %v2129_v6  ;;  %v1421_v10 = vld [vmem:[#allocation11 + $0x30] sm:$0xff]  ;;  %s2282_s10 = sld [smem:[#allocation31_spill]]  ;;  %s1396_s7 = sshll.u32 %s1946_s15, 3 }
  0x76   : > { %918 = vmatpush.bf16.msra.mxu2 %v1422_v4  ;;  %v1414_v9 = vld [vmem:[#allocation10 + $0x38] sm:$0xff]  ;;  %v1413_v13 = vld [vmem:[#allocation10 + $0x30] sm:$0xff]  ;;  %v1420_v14 = vld [vmem:[#allocation11 + $0x28] sm:$0xff]  ;;  %s2283_s27 = sld [smem:[#allocation33_spill]]  ;;  %s598_s18 = scalar_lea.vmem [#allocation14], %s1255_s6 }
  0x77   : > { %v1265_v5 = vmul.f32 -1.442695, %v676_v3  ;;  %v1406_v11 = vld [vmem:[#allocation8 + $0x38] sm:$0xff]  ;;  %v1264_v12 = vmul.f32 -1.442695, %v654_v7  ;;  %779 = vmatpush.bf16.msra.mxu0 %v1414_v9  ;;  %v1405_v15 = vld [vmem:[#allocation8 + $0x30] sm:$0xff] }
  0x78   : > { %840 = vmatpush.bf16.msra.mxu1 %v1406_v11  ;;  %v1412_v18 = vld [vmem:[#allocation10 + $0x28] sm:$0xff]  ;;  %v1419_v19 = vld [vmem:[#allocation11 + $0x20] sm:$0xff]  ;;  %v1418_v27 = vld [vmem:[#allocation11 + $0x18] sm:$0xff]  ;;  %s2284_s23 = sld [smem:[#allocation34_spill]]  ;;  %s1087_s14 = sshll.u32 %s598_s18, 4  ;;  %s1088_s14 = int_to_ptr.vmem [resolvable:$true] %s1087_s14 }
  0x79   : > { %1536 = vpow2.f32 %v1265_v5  ;;  %v1404_v21 = vld [vmem:[#allocation8 + $0x28] sm:$0xff]  ;;  %v1411_v26 = vld [vmem:[#allocation10 + $0x20] sm:$0xff]  ;;  %v1410_v33 = vld [vmem:[#allocation10 + $0x18] sm:$0xff]  ;;  %s1075_s15 = scalar_lea.sflag [#allocation4], %s2095_s1 }
  0x7a   : > { %919 = vmatpush.bf16.msra.mxu2 %v1421_v10  ;;  %1538 = vpow2.f32 %v1264_v12  ;;  %v1403_v30 = vld [vmem:[#allocation8 + $0x20] sm:$0xff]  ;;  %v1417_v34 = vld [vmem:[#allocation11 + $0x10] sm:$0xff]  ;;  %v1402_v36 = vld [vmem:[#allocation8 + $0x18] sm:$0xff] }
  0x7b   : > { %780 = vmatpush.bf16.msra.mxu0 %v1413_v13  ;;  %v1409_v42 = vld [vmem:[#allocation10 + $0x10] sm:$0xff]  ;;  %v1416_v43 = vld [vmem:[#allocation11 + $0x8] sm:$0xff]  ;;  %v1415_v55 = vld [vmem:[#allocation11] sm:$0xff] }
  0x7c   : > { %841 = vmatpush.bf16.msra.mxu1 %v1405_v15  ;;  %v1401_v45 = vld [vmem:[#allocation8 + $0x10] sm:$0xff]  ;;  %v1408_v54 = vld [vmem:[#allocation10 + $0x8] sm:$0xff]  ;;  %v1407_v5 = vld [vmem:[#allocation10] sm:$0xff] }
  0x7d   : > { %606 = vadd.xlane.f32.xlu0 %v605_v1  ;;  %v1400_v59 = vld [vmem:[#allocation8 + $0x8] sm:$0xff]  ;;  %v1399_v10 = vld [vmem:[#allocation8] sm:$0xff]  ;;  %v1430_v47 = vld [vmem:[#allocation13 + $0x38] sm:$0xff] }
  0x7e   : > { %920 = vmatpush.bf16.msra.mxu2 %v1420_v14  ;;  %1059 = vmatpush.bf16.msra.mxu3 %v1430_v47  ;;  %v1429_v48 = vld [vmem:[#allocation13 + $0x30] sm:$0xff]  ;;  %s1085_s19 = scalar_lea.hbm %s2284_s23, %s1396_s7  ;;  %s1786_s6 = scalar_lea.hbm %s2284_s23, 16 }
  0x7f   : > { %v1537_v16 = vpop.eup %1536  ;;  %781 = vmatpush.bf16.msra.mxu0 %v1412_v18  ;;  %s1089_s24 = sshll.u32 %s1085_s19, 4  ;;  %s1090_s24 = int_to_ptr.hbm [resolvable:$true] %s1089_s24 }
  0x80   : > { %v680_v20 = vadd.f32 1.0, %v1537_v16  ;;  %v1539_v23 = vpop.eup %1538  ;;  %842 = vmatpush.bf16.msra.mxu1 %v1404_v21  ;;  %v1530_v16 = vld [vmem:[%s2219_s3] ss:$0 sm:$0xff]  ;;  %s1780_s25 = sshra.s32 %s1090_s24, 4  ;;  %s1781_s25 = int_to_ptr.hbm [resolvable:$true] %s1780_s25 }
  0x81   : > { %v658_v28 = vadd.f32 1.0, %v1539_v23  ;;  %s1782_s13 = scalar_lea.hbm %s1781_s25, 8  ;;  %p1787_p8 = scmp.lt.s32.totalorder %s1781_s25, %s2284_s23 }
  0x82   : > { %1540 = vrcp.f32 %v680_v20  ;;  %921 = vmatpush.bf16.msra.mxu2 %v1419_v19  ;;  %v690_v38 = vand.u32 2147483647, %v680_v20  ;;  %v692_v39 = vand.u32 2147483648, %v680_v20  ;;  %vm686_vm0 = vweird.f32 %v680_v20  ;;  %1060 = vmatpush.bf16.msra.mxu3 %v1429_v48  ;;  %p1783_p12 = scmp.ne.s32.totalorder %s1781_s25, %s1782_s13  ;;  %p1788_p6 = scmp.lt.s32.totalorder %s1786_s6, %s1782_s13 }
  0x83   : > { %1542 = vrcp.f32 %v658_v28  ;;  %782 = vmatpush.bf16.msra.mxu0 %v1411_v26  ;;  %vm664_vm4 = vweird.f32 %v658_v28  ;;  %v670_v50 = vand.u32 2147483648, %v658_v28  ;;  %v668_v53 = vand.u32 2147483647, %v658_v28 }
  0x84   : > { %843 = vmatpush.bf16.msra.mxu1 %v1403_v30  ;;  %vm2145_vm3 = vcmp.eq.f32.partialorder %v690_v38, 8.507059e+37  ;;  %v693_v49 = vor.u32 1.1754944e-38, %v692_v39  ;;  %p1784_p2 = pnand %p1783_p12, %p2003_p4  ;;  %p1789_p10 = por %p1788_p6, %p1787_p8 }
  0x85   : > { %v671_v62 = vor.u32 1.1754944e-38, %v670_v50  ;;  %vm669_vm7 = vcmp.eq.f32.partialorder %v668_v53, 8.507059e+37  ;;  %v1428_v50 = vld [vmem:[#allocation13 + $0x28] sm:$0xff] }
  0x86   : > { %922 = vmatpush.bf16.msra.mxu2 %v1418_v27  ;;  %1061 = vmatpush.bf16.msra.mxu3 %v1428_v50  ;;  %p1785_p1 = pneg %p1784_p2 }
  0x87   : > { %783 = vmatpush.bf16.msra.mxu0 %v1410_v33 }
  0x88   : > { %v1541_v32 = vpop.eup %1540  ;;  %844 = vmatpush.bf16.msra.mxu1 %v1402_v36  ;;  %p1790_p11 = pnand %p1789_p10, %p1785_p1 }
  0x89   : > { %v682_v37 = vmul.f32 %v1541_v32, %v680_v20  ;;  %vm687_vm1 = vweird.f32 %v1541_v32  ;;  %v1543_v41 = vpop.eup %1542 }
  0x8a   : > { %923 = vmatpush.bf16.msra.mxu2 %v1417_v34  ;;  %v660_v46 = vmul.f32 %v1543_v41, %v658_v28  ;;  %vm2141_vm2 = vmor %vm686_vm0, %vm687_vm1  ;;  %vm665_vm5 = vweird.f32 %v1543_v41 }
  0x8b   : > { %v683_v40 = vsub.f32 1.0, %v682_v37  ;;  %784 = vmatpush.bf16.msra.mxu0 %v1409_v42  ;;  %vm666_vm6 = vmor %vm664_vm4, %vm665_vm5 }
  0x8c   : > { %v661_v52 = vsub.f32 1.0, %v660_v46  ;;  %845 = vmatpush.bf16.msra.mxu1 %v1401_v45 }
  0x8d   : > { %v684_v44 = vmul.f32 %v1541_v32, %v683_v40 }
  0x8e   : > { %924 = vmatpush.bf16.msra.mxu2 %v1416_v43  ;;  %v662_v58 = vmul.f32 %v1543_v41, %v661_v52 }
  0x8f   : > { %v685_v51 = vadd.f32 %v1541_v32, %v684_v44  ;;  %785 = vmatpush.bf16.msra.mxu0 %v1408_v54  ;;  %v1427_v54 = vld [vmem:[#allocation13 + $0x20] sm:$0xff] }
  0x90   : > { %v663_v1 = vadd.f32 %v1543_v41, %v662_v58  ;;  %846 = vmatpush.bf16.msra.mxu1 %v1400_v59  ;;  %1062 = vmatpush.bf16.msra.mxu3 %v1427_v54  ;;  %v1425_v59 = vld [vmem:[#allocation13 + $0x10] sm:$0xff] }
  0x91   : > { %v689_v57 = vsel %vm2141_vm2, %v1541_v32, %v685_v51 }
  0x92   : > { %v694_v61 = vsel %vm2145_vm3, %v693_v49, %v689_v57  ;;  %925 = vmatpush.bf16.msra.mxu2 %v1415_v55  ;;  %v667_v9 = vsel %vm666_vm6, %v1543_v41, %v663_v1  ;;  %v1532_v41 = vld [vmem:[%s2224_s8] ss:$0 sm:$0xff]  ;;  %v1426_v57 = vld [vmem:[#allocation13 + $0x18] sm:$0xff] }
  0x93   : > { %v696_v63 = vmul.f32 %v694_v61, %v676_v3  ;;  %v672_v12 = vsel %vm669_vm7, %v671_v62, %v667_v9  ;;  %786 = vmatpush.bf16.msra.mxu0 %v1407_v5  ;;  %v1423_v1 = vld [vmem:[#allocation13] sm:$0xff] }
  0x94   : > { %v674_v13 = vmul.f32 %v672_v12, %v654_v7  ;;  %847 = vmatpush.bf16.msra.mxu1 %v1399_v10  ;;  %v1531_v7 = vld [vmem:[%s2220_s4] ss:$0 sm:$0xff]  ;;  %1063 = vmatpush.bf16.msra.mxu3 %v1426_v57 }
  0x95   : > { %v1533_v10 = vld [vmem:[%s2281_s5] ss:$0 sm:$0xff] }
  0x96   : > { %v714_v2 = vpack.c.bf16 %v674_v13, %v674_v13  ;;  %v1534_v13 = vld [vmem:[%s2282_s10] ss:$0 sm:$0xff] }
  0x98   : > { %787 = vmatmul.bf16.vlgmr.msra.gmra.mxu0 %v714_v2  ;;  %1064 = vmatpush.bf16.msra.mxu3 %v1425_v59 }
  0xe8   : > { %v603_v8 = vpop.xlane.xlu0 %602 }
  0xe9   : > { %v2134_v17 = vmul.f32 0.03125, %v603_v8  ;;  %v853_v8 = vpack.c.bf16 %v696_v63, %v696_v63 }
  0xeb   : > { %v609_v24 = vmul.f32 %v2134_v17, %v2134_v17  ;;  %926 = vmatmul.bf16.vlgmr.msra.gmra.mxu2 %v853_v8  ;;  %v612_v15 = vsub.f32 %v2119_v0, %v2134_v17 }
  0xf0   : > { %v607_v22 = vpop.xlane.xlu0 %606 }
  0xf1   : > { %v608_v25 = vmul.f32 0.03125, %v607_v22 }
  0xf3   : > { %v610_v29 = vsub.f32 %v608_v25, %v609_v24 }
  0xf5   : > { %v611_v31 = vmax.f32 %v610_v29, 0.0 }
  0xf7   : > { %v2138_v35 = vadd.f32 1e-05, %v611_v31 }
  0xf9   : > { %1544 = vrsqrt.f32 %v2138_v35  ;;  %vm620_vm9 = vweird.f32 %v2138_v35 }
  0xff   : > { %v1545_v56 = vpop.eup %1544 }
 0x100   : > { %v615_v60 = vmul.f32 %v1545_v56, %v2138_v35  ;;  %vm621_vm8 = vweird.f32 %v1545_v56 }
 0x101   : > { %vm622_vm10 = vmor %vm620_vm9, %vm621_vm8 }
 0x102   : > { %v616_v4 = vmul.f32 %v1545_v56, %v615_v60  ;;  %v1424_v60 = vld [vmem:[#allocation13 + $0x8] sm:$0xff] }
 0x103   : > { %1065 = vmatpush.bf16.msra.mxu3 %v1424_v60 }
 0x104   : > { %v617_v11 = vmul.f32 0.5, %v616_v4 }
 0x106   : > { %v618_v14 = vsub.f32 1.5, %v617_v11 }
 0x107   : > { %1066 = vmatpush.bf16.msra.mxu3 %v1423_v1 }
 0x108   : > { %v619_v3 = vmul.f32 %v1545_v56, %v618_v14 }
 0x10a   : > { %v623_v18 = vsel %vm622_vm10, %v1545_v56, %v619_v3 }
 0x10b   : > { %v624_v6 = vmul.f32 %v623_v18, %v612_v15 }
 0x10d   : > { %v628_v19 = vmul.f32 %v1530_v16, %v624_v6 }
 0x10f   : > { %v632_v20 = vadd.f32 %v1531_v7, %v628_v19 }
 0x111   : > { %v1263_v21 = vmul.f32 -1.442695, %v632_v20 }
 0x113   : > { %1546 = vpow2.f32 %v1263_v21 }
 0x115   : > { %v788_v35 = vpop.f32.mrf.mxu0 }
 0x119   : > { %v1547_v22 = vpop.eup %1546 }
 0x11a   : > { %v636_v23 = vadd.f32 1.0, %v1547_v22 }
 0x11c   : > { %1548 = vrcp.f32 %v636_v23  ;;  %v648_v26 = vand.u32 2147483648, %v636_v23  ;;  %v646_v28 = vand.u32 2147483647, %v636_v23  ;;  %vm642_vm12 = vweird.f32 %v636_v23 }
 0x11d   : > { %v790_v37 = vpop.f32.mrf.mxu0 }
 0x11e   : > { %v649_v30 = vor.u32 1.1754944e-38, %v648_v26  ;;  %vm647_vm14 = vcmp.eq.f32.partialorder %v646_v28, 8.507059e+37 }
 0x122   : > { %v1549_v17 = vpop.eup %1548 }
 0x123   : > { %v638_v24 = vmul.f32 %v1549_v17, %v636_v23  ;;  %vm643_vm11 = vweird.f32 %v1549_v17 }
 0x124   : > { %vm644_vm13 = vmor %vm642_vm12, %vm643_vm11 }
 0x125   : > { %v639_v25 = vsub.f32 1.0, %v638_v24 }
 0x127   : > { %v640_v27 = vmul.f32 %v1549_v17, %v639_v25 }
 0x129   : > { %v641_v29 = vadd.f32 %v1549_v17, %v640_v27  ;;  %v1535_v27 = vld [vmem:[%s2283_s27] ss:$0 sm:$0xff] }
 0x12b   : > { %v645_v31 = vsel %vm644_vm13, %v1549_v17, %v641_v29 }
 0x12c   : > { %v650_v32 = vsel %vm647_vm14, %v649_v30, %v645_v31 }
 0x12d   : > { %v652_v33 = vmul.f32 %v650_v32, %v632_v20 }
 0x12f   : > { %v697_v34 = vpack.c.bf16 %v652_v33, %v652_v33 }
 0x131   : > { %848 = vmatmul.bf16.vlgmr.msra.gmra.mxu1 %v697_v34 }
 0x16e   : > { %v927_v36 = vpop.f32.mrf.mxu2 }
 0x176   : > { %v929_v38 = vpop.f32.mrf.mxu2 }
 0x1ae   : > { %v849_v39 = vpop.f32.mrf.mxu1 }
 0x1af   : > { %v850_v40 = vadd.f32 %v849_v39, %v788_v35 }
 0x1b1   : > { %v931_v42 = vadd.f32 %v927_v36, %v850_v40 }
 0x1b3   : > { %v936_v43 = vadd.f32 %v1532_v41, %v931_v42 }
 0x1b5   : > { %939 = vadd.xlane.f32.xlu1 %v936_v43  ;;  %v942_v45 = vmul.f32 %v936_v43, %v936_v43 }
 0x1b6   : > { %v851_v44 = vpop.f32.mrf.mxu1 }
 0x1bd   : > { %943 = vadd.xlane.f32.xlu1 %v942_v45 }
 0x228   : > { %v940_v46 = vpop.xlane.xlu1 %939 }
 0x229   : > { %v941_v49 = vmul.f32 0.015625, %v940_v46 }
 0x22b   : > { %v946_v52 = vmul.f32 %v941_v49, %v941_v49  ;;  %v949_v9 = vsub.f32 %v936_v43, %v941_v49 }
 0x230   : > { %v944_v51 = vpop.xlane.xlu1 %943 }
 0x231   : > { %v945_v53 = vmul.f32 0.015625, %v944_v51 }
 0x233   : > { %v947_v55 = vsub.f32 %v945_v53, %v946_v52 }
 0x235   : > { %v948_v56 = vmax.f32 %v947_v55, 0.0 }
 0x237   : > { %v950_v58 = vadd.f32 1e-05, %v948_v56 }
 0x239   : > { %1550 = vrsqrt.f32 %v950_v58  ;;  %vm957_vm0 = vweird.f32 %v950_v58 }
 0x23f   : > { %v1551_v61 = vpop.eup %1550 }
 0x240   : > { %v952_v62 = vmul.f32 %v1551_v61, %v950_v58  ;;  %vm958_vm15 = vweird.f32 %v1551_v61 }
 0x241   : > { %vm959_vm1 = vmor %vm957_vm0, %vm958_vm15 }
 0x242   : > { %v953_v63 = vmul.f32 %v1551_v61, %v952_v62 }
 0x244   : > { %v954_v4 = vmul.f32 0.5, %v953_v63 }
 0x246   : > { %v955_v5 = vsub.f32 1.5, %v954_v4 }
 0x248   : > { %v956_v8 = vmul.f32 %v1551_v61, %v955_v5 }
 0x24a   : > { %v960_v11 = vsel %vm959_vm1, %v1551_v61, %v956_v8 }
 0x24b   : > { %v961_v12 = vmul.f32 %v960_v11, %v949_v9 }
 0x24d   : > { %v965_v14 = vmul.f32 %v1533_v10, %v961_v12 }
 0x24f   : > { %v969_v2 = vadd.f32 %v1534_v13, %v965_v14 }
 0x251   : > { %v1362_v3 = vmul.f32 -1.442695, %v969_v2 }
 0x253   : > { %1552 = vpow2.f32 %v1362_v3 }
 0x259   : > { %v1553_v15 = vpop.eup %1552 }
 0x25a   : > { %v973_v16 = vadd.f32 1.0, %v1553_v15 }
 0x25c   : > { %1554 = vrcp.f32 %v973_v16  ;;  %v985_v19 = vand.u32 2147483648, %v973_v16  ;;  %v983_v21 = vand.u32 2147483647, %v973_v16  ;;  %vm979_vm3 = vweird.f32 %v973_v16 }
 0x25e   : > { %v986_v23 = vor.u32 1.1754944e-38, %v985_v19  ;;  %vm984_vm5 = vcmp.eq.f32.partialorder %v983_v21, 8.507059e+37 }
 0x262   : > { %v1555_v18 = vpop.eup %1554 }
 0x263   : > { %v975_v6 = vmul.f32 %v1555_v18, %v973_v16  ;;  %vm980_vm2 = vweird.f32 %v1555_v18 }
 0x264   : > { %vm981_vm4 = vmor %vm979_vm3, %vm980_vm2 }
 0x265   : > { %v976_v7 = vsub.f32 1.0, %v975_v6 }
 0x267   : > { %v977_v20 = vmul.f32 %v1555_v18, %v976_v7 }
 0x269   : > { %v978_v22 = vadd.f32 %v1555_v18, %v977_v20 }
 0x26b   : > { %v982_v17 = vsel %vm981_vm4, %v1555_v18, %v978_v22 }
 0x26c   : > { %v987_v24 = vsel %vm984_vm5, %v986_v23, %v982_v17 }
 0x26d   : > { %v989_v25 = vmul.f32 %v987_v24, %v969_v2 }
 0x26f   : > { %v990_v26 = vpack.c.bf16 %v989_v25, %v989_v25 }
 0x271   : > { %1067 = vmatmul.bf16.vlgmr.msra.gmra.mxu3 %v990_v26 }
 0x2f4   : > { %v1068_v28 = vpop.f32.mrf.mxu3 }
 0x2f5   : > { %v1069_v29 = vadd.f32 %v1535_v27, %v1068_v28 }
 0x2f7   : > { %v1072_v30 = vadd.f32 %v1069_v29, %v2119_v0 }
 0x2f9   : > { %1073 = vst [vmem:[%s598_s18] sm:$0xff] %v1072_v30 }
 0x2fa   : > { %1793 = shalt.err (!%p1790_p11)
}
 0x2fb   : > { %1453 = dma.vmem_to_hbm [thread:$0]  (%p2003_p4), %s1088_s14, 128, %s1090_s24, %s1075_s15  }
 0x2fc   : > { %v1070_v0 = vpop.f32.mrf.mxu3 }
 0x2fd PF: > { %s2286_s1 = sld [smem:[#allocation20_spill]]  ;;  %p2288_p13 = scmp.ge.s32.totalorder %s1844_s28, 2 }
 0x2ff   : > { %p1479_p3 = pnand %p2288_p13, %p2007_p5 }
 0x301   : > { %p1480_p7 = pneg %p1479_p3 }
 0x303   : > { %s1101_s9 = sand.u32 1, %s2286_s1  }
 0x304   : > { %s1102_s10 = scalar_lea.sflag [#allocation4], %s1101_s9 }
 0x305   : > { %1827 = dma.done.wait (%p1480_p7), %s1102_s10, 128  }
 0x306   : > { %1829 = vsyncadd (%p1480_p7), %s1102_s10, 4294967168  ;;  %s2289_s28 = sld [smem:[#allocation22_spill]]  ;;  %s2292_s25 = smov %s1836_s26 }
 0x307   : > { %s2290_s7 = sld [smem:[#allocation21_spill]] }
 0x308   : > { %s2291_s27 = sld [smem:[#allocation23_spill]] }
 0x30c   : > { %p31_p9 = scmp.ge.s32.totalorder %s2289_s28, 4  }
 0x30d   : > { %s2293_s26 = smov %s2290_s7 }
 0x30e   :  { %33 = sbr.rel (!%p31_p9) target bundleno = 19 (0x13), region = 157 }
 0x313   :  { %1108 = vsyncpa [#allocation3], 1 }
 0x314   :  { %1110 = vsyncpa [#allocation3 + $0x1], 1 }
 0x315   :  { %1111 = vsyncpa [#allocation6], 1 }
 0x316   :  { %1113 = vsyncpa [#allocation6 + $0x1], 1 }
 0x317   :  { %1114 = vsyncpa [#allocation9], 1 }
 0x318   :  { %1115 = vsyncpa [#allocation12], 1 }
 0x319   :  { %1116 = vsyncpa [#allocation4], 1 }
 0x31a   :  { %1118 = vsyncpa [#allocation4 + $0x1], 1 }

</bundles_post_ra>
